<compile_context>
chip_gen: v7x
topology: tpu7x:2x2x1
jax: 0.10.0
libtpu: 0.0.40
codegen_flags: <defaults>
</compile_context>

<pallas_src>
import functools

import jax
import jax.numpy as jnp
from jax.experimental import pallas as pl
from jax.experimental.pallas import tpu as pltpu

_MIB = 1024 * 1024
_LANE = 128


def _group_batchnorm_kernel(x_ref, w_ref, b_ref, o_ref, *, eps, n_elems):
    """x_ref/o_ref: (Kn, Kg, R, L); w_ref/b_ref: (Kg, R, 1)."""
    # Per-group sums, accumulated in f32 without keeping a full-slab f32 copy
    # live across all consumers.  Nested single-axis sums (lane then sublane).
    s1 = jnp.sum(
        jnp.sum(x_ref[...], axis=-1, keepdims=True, dtype=jnp.float32),
        axis=-2, keepdims=True)                           # (Kn, Kg, 1, 1)
    xsq = jnp.square(x_ref[...].astype(jnp.float32))
    s2 = jnp.sum(
        jnp.sum(xsq, axis=-1, keepdims=True),
        axis=-2, keepdims=True)                           # (Kn, Kg, 1, 1)

    mean = s1 * (1.0 / n_elems)
    # Unbiased variance (ddof=1), E[x^2]-E[x]^2 form, clamped against
    # catastrophic cancellation.
    var = jnp.maximum((s2 - s1 * mean) * (1.0 / (n_elems - 1)), 0.0)
    inv = 1.0 / (jnp.sqrt(var) + eps)                     # tiny (Kn,Kg,1,1)

    w = w_ref[...].astype(jnp.float32)[None]              # (1, Kg, R, 1)
    b = b_ref[...].astype(jnp.float32)[None]              # (1, Kg, R, 1)
    scale = w * inv                                       # (Kn, Kg, R, 1)
    shift = b - mean * scale                              # (Kn, Kg, R, 1)

    # Single fused multiply-add over the whole block, cast inlined.
    o_ref[...] = (x_ref[...].astype(jnp.float32) * scale
                  + shift).astype(o_ref.dtype)


def _largest_divisor_leq(n, cap):
    cap = max(1, min(n, cap))
    for d in range(cap, 0, -1):
        if n % d == 0:
            return d
    return 1


def group_batchnorm2d(x, weight, bias, group_num, eps=1e-10):
    """x: (N, C, H, W); weight/bias: (C, 1, 1).  Returns (N, C, H, W)."""
    N, C, H, W = x.shape
    G = int(group_num)
    assert C >= G and C % G == 0, "channels must be >= and divisible by groups"
    Cg = C // G
    HW = H * W
    n_elems = Cg * HW
    assert n_elems > 1, "unbiased std undefined for a single element per group"

    # Lane-dense layout: pad each channel's spatial extent with zeros up to a
    # multiple of 128 so stores are unmasked.  Zeros don't affect the sums.
    reps = -(-HW // _LANE)
    HWp = reps * _LANE
    R = Cg * reps
    L = _LANE

    if HWp == HW:
        xg = x.reshape(N, G, R, L)
    else:
        x_flat = x.reshape(N, C, HW)
        x_flat = jnp.pad(x_flat, ((0, 0), (0, 0), (0, HWp - HW)))
        xg = x_flat.reshape(N, G, R, L)

    # Per-row affine params (each channel's value repeated over its rows).
    w_rows = jnp.repeat(weight.reshape(G, Cg), reps, axis=1).reshape(G, R, 1)
    b_rows = jnp.repeat(bias.reshape(G, Cg), reps, axis=1).reshape(G, R, 1)

    elt = x.dtype.itemsize
    slab_bytes = R * L * elt                     # one group, one batch item

    # Generation-aware block-size targets and VMEM caps.
    try:
        vmem_cap = int(pltpu.get_tpu_info().vmem_capacity_bytes)
    except Exception:
        vmem_cap = 64 * _MIB
    if vmem_cap <= 64 * _MIB:                    # v7x-class (64 MiB VMEM/TC)
        target_bytes, ceil_bytes, limit_cap = 4 * _MIB, 8 * _MIB, 48 * _MIB
    else:                                        # v5e / v6e-class (128 MiB)
        target_bytes, ceil_bytes, limit_cap = 2 * _MIB, 16 * _MIB, 100 * _MIB

    # Fuse several groups (and batch items) per step to amortise per-step
    # pipeline overhead, staying under the per-step block ceiling.
    max_fuse = max(1, ceil_bytes // slab_bytes)
    want = max(1, min(int(round(target_bytes / slab_bytes)), max_fuse, N * G))
    Kg = _largest_divisor_leq(G, want)
    Kn = _largest_divisor_leq(N, max(1, want // Kg))
    # Keep >= 2 grid steps when possible so both v7x TensorCores get work.
    if (G // Kg) * (N // Kn) < 2 and N * G >= 2:
        if N >= 2:
            Kn = _largest_divisor_leq(N, N // 2)
        else:
            Kg = _largest_divisor_leq(G, G // 2)

    block_bytes = Kn * Kg * slab_bytes
    f32_extra = 0 if elt >= 4 else 2 * Kn * Kg * R * L * 4
    param_bytes = 4 * Kg * R * 4
    need = 4 * block_bytes + f32_extra + param_bytes
    vmem_bytes = int(min(limit_cap, max(16 * _MIB, need + 4 * _MIB)))

    cost = pl.CostEstimate(
        flops=6 * N * G * R * L,
        transcendentals=N * G,
        bytes_accessed=2 * N * G * R * L * elt + 2 * G * R * 4,
    )

    kernel = functools.partial(_group_batchnorm_kernel,
                               eps=float(eps), n_elems=n_elems)

    out = pl.pallas_call(
        kernel,
        out_shape=jax.ShapeDtypeStruct((N, G, R, L), x.dtype),
        grid_spec=pltpu.PrefetchScalarGridSpec(
            num_scalar_prefetch=0,
            # G outermost, N innermost: the weight/bias block index is
            # constant across consecutive inner steps (stays resident).
            grid=(G // Kg, N // Kn),
            in_specs=[
                pl.BlockSpec((Kn, Kg, R, L), lambda gc, nc: (nc, gc, 0, 0)),
                pl.BlockSpec((Kg, R, 1), lambda gc, nc: (gc, 0, 0)),
                pl.BlockSpec((Kg, R, 1), lambda gc, nc: (gc, 0, 0)),
            ],
            out_specs=pl.BlockSpec((Kn, Kg, R, L),
                                   lambda gc, nc: (nc, gc, 0, 0)),
        ),
        compiler_params=pltpu.CompilerParams(
            dimension_semantics=("parallel", "parallel"),
            vmem_limit_bytes=vmem_bytes),
        cost_estimate=cost,
    )(xg, w_rows, b_rows)

    out = out.reshape(N, C, HWp)
    if HWp != HW:
        out = out[..., :HW]
    return out.reshape(N, C, H, W)


def _reference(x, weight, bias, group_num, eps=1e-10):
    N, C, H, W = x.shape
    xr = x.reshape(N, group_num, -1)
    mean = jnp.mean(xr, axis=2, keepdims=True)
    var = jnp.sum((xr - mean) ** 2, axis=2, keepdims=True) / (xr.shape[2] - 1)
    std = jnp.sqrt(var)
    xr = (xr - mean) / (std + eps)
    xr = xr.reshape(N, C, H, W)
    return xr * weight + bias


if __name__ == "__main__":
    # Small shapes consistent with the module (c_num >= group_num).
    N, C, H, W = 2, 4, 16, 16
    group_num = 2
    eps = 1e-10

    key = jax.random.PRNGKey(0)
    kx, kw = jax.random.split(key)
    x = jax.random.normal(kx, (N, C, H, W), dtype=jnp.float32)
    # Parameter init mirroring __init__: weight ~ randn, bias = 0.
    weight = jax.random.normal(kw, (C, 1, 1), dtype=jnp.float32)
    bias = jnp.zeros((C, 1, 1), dtype=jnp.float32)

    out = group_batchnorm2d(x, weight, bias, group_num, eps)
    out = jax.block_until_ready(out)

    ref = _reference(x, weight, bias, group_num, eps)
    assert out.shape == (N, C, H, W)
    assert jnp.allclose(out, ref, atol=1e-4, rtol=1e-4), \
        float(jnp.max(jnp.abs(out - ref)))

    print("KERNEL_OK")
</pallas_src>

<mosaic_0001>
module attributes {stable_mosaic.version = 11 : i64} {
  func.func @_group_batchnorm_kernel(%arg0: i32, %arg1: i32, %arg2: memref<1x2x4x128xf32, #tpu.memory_space<vmem>>, %arg3: memref<2x4x1xf32, #tpu.memory_space<vmem>>, %arg4: memref<2x4x1xf32, #tpu.memory_space<vmem>>, %arg5: memref<1x2x4x128xf32, #tpu.memory_space<vmem>>) attributes {dimension_semantics = [#tpu.dimension_semantics<parallel>, #tpu.dimension_semantics<parallel>], iteration_bounds = array<i64: 1, 2>, scalar_prefetch = 0 : i64, scratch_operands = 0 : i64, tpu.core_type = #tpu.core_type<tc>, window_params = [{transform_indices = @transform_0, window_bounds = array<i64: 1, 2, 4, 128>}, {transform_indices = @transform_1, window_bounds = array<i64: 2, 4, 1>}, {transform_indices = @transform_2, window_bounds = array<i64: 2, 4, 1>}, {transform_indices = @transform_3, window_bounds = array<i64: 1, 2, 4, 128>}]} {
    %c0 = arith.constant 0 : index
    %c0_0 = arith.constant 0 : index
    %c0_1 = arith.constant 0 : index
    %c0_2 = arith.constant 0 : index
    %0 = vector.load %arg2[%c0, %c0_0, %c0_1, %c0_2] : memref<1x2x4x128xf32, #tpu.memory_space<vmem>>, vector<1x2x4x128xf32>
    %cst = arith.constant dense<0.000000e+00> : vector<1x2x4xf32>
    %1 = vector.multi_reduction <add>, %0, %cst [3] : vector<1x2x4x128xf32> to vector<1x2x4xf32>
    %2 = vector.shape_cast %1 : vector<1x2x4xf32> to vector<1x2x4x1xf32>
    %cst_3 = arith.constant dense<0.000000e+00> : vector<1x2x1xf32>
    %3 = vector.multi_reduction <add>, %2, %cst_3 [2] : vector<1x2x4x1xf32> to vector<1x2x1xf32>
    %4 = vector.shape_cast %3 : vector<1x2x1xf32> to vector<1x2x1x1xf32>
    %c0_4 = arith.constant 0 : index
    %c0_5 = arith.constant 0 : index
    %c0_6 = arith.constant 0 : index
    %c0_7 = arith.constant 0 : index
    %5 = vector.load %arg2[%c0_4, %c0_5, %c0_6, %c0_7] : memref<1x2x4x128xf32, #tpu.memory_space<vmem>>, vector<1x2x4x128xf32>
    %6 = arith.mulf %5, %5 : vector<1x2x4x128xf32>
    %cst_8 = arith.constant dense<0.000000e+00> : vector<1x2x4xf32>
    %7 = vector.multi_reduction <add>, %6, %cst_8 [3] : vector<1x2x4x128xf32> to vector<1x2x4xf32>
    %8 = vector.shape_cast %7 : vector<1x2x4xf32> to vector<1x2x4x1xf32>
    %cst_9 = arith.constant dense<0.000000e+00> : vector<1x2x1xf32>
    %9 = vector.multi_reduction <add>, %8, %cst_9 [2] : vector<1x2x4x1xf32> to vector<1x2x1xf32>
    %10 = vector.shape_cast %9 : vector<1x2x1xf32> to vector<1x2x1x1xf32>
    %cst_10 = arith.constant 0.001953125 : f32
    %11 = vector.broadcast %cst_10 : f32 to vector<1x2x1x1xf32>
    %12 = arith.mulf %4, %11 : vector<1x2x1x1xf32>
    %13 = arith.mulf %4, %12 : vector<1x2x1x1xf32>
    %14 = arith.subf %10, %13 : vector<1x2x1x1xf32>
    %cst_11 = arith.constant 0.00195694715 : f32
    %15 = vector.broadcast %cst_11 : f32 to vector<1x2x1x1xf32>
    %16 = arith.mulf %14, %15 : vector<1x2x1x1xf32>
    %cst_12 = arith.constant 0.000000e+00 : f32
    %17 = vector.broadcast %cst_12 : f32 to vector<1x2x1x1xf32>
    %18 = arith.maximumf %16, %17 : vector<1x2x1x1xf32>
    %19 = math.sqrt %18 : vector<1x2x1x1xf32>
    %cst_13 = arith.constant 1.000000e-10 : f32
    %20 = vector.broadcast %cst_13 : f32 to vector<1x2x1x1xf32>
    %21 = arith.addf %19, %20 : vector<1x2x1x1xf32>
    %cst_14 = arith.constant 1.000000e+00 : f32
    %22 = vector.broadcast %cst_14 : f32 to vector<1x2x1x1xf32>
    %23 = arith.divf %22, %21 : vector<1x2x1x1xf32>
    %c0_15 = arith.constant 0 : index
    %c0_16 = arith.constant 0 : index
    %c0_17 = arith.constant 0 : index
    %24 = vector.load %arg3[%c0_15, %c0_16, %c0_17] : memref<2x4x1xf32, #tpu.memory_space<vmem>>, vector<2x4x1xf32>
    %25 = vector.shape_cast %24 : vector<2x4x1xf32> to vector<1x2x4x1xf32>
    %c0_18 = arith.constant 0 : index
    %c0_19 = arith.constant 0 : index
    %c0_20 = arith.constant 0 : index
    %26 = vector.load %arg4[%c0_18, %c0_19, %c0_20] : memref<2x4x1xf32, #tpu.memory_space<vmem>>, vector<2x4x1xf32>
    %27 = vector.shape_cast %26 : vector<2x4x1xf32> to vector<1x2x4x1xf32>
    %28 = vector.broadcast %23 : vector<1x2x1x1xf32> to vector<1x2x4x1xf32>
    %29 = arith.mulf %25, %28 : vector<1x2x4x1xf32>
    %30 = vector.broadcast %12 : vector<1x2x1x1xf32> to vector<1x2x4x1xf32>
    %31 = arith.mulf %30, %29 : vector<1x2x4x1xf32>
    %32 = arith.subf %27, %31 : vector<1x2x4x1xf32>
    %c0_21 = arith.constant 0 : index
    %c0_22 = arith.constant 0 : index
    %c0_23 = arith.constant 0 : index
    %c0_24 = arith.constant 0 : index
    %33 = vector.load %arg2[%c0_21, %c0_22, %c0_23, %c0_24] : memref<1x2x4x128xf32, #tpu.memory_space<vmem>>, vector<1x2x4x128xf32>
    %34 = vector.broadcast %29 : vector<1x2x4x1xf32> to vector<1x2x4x128xf32>
    %35 = arith.mulf %33, %34 : vector<1x2x4x128xf32>
    %36 = vector.broadcast %32 : vector<1x2x4x1xf32> to vector<1x2x4x128xf32>
    %37 = arith.addf %35, %36 : vector<1x2x4x128xf32>
    %c0_25 = arith.constant 0 : index
    %c0_26 = arith.constant 0 : index
    %c0_27 = arith.constant 0 : index
    %c0_28 = arith.constant 0 : index
    %38 = vector.load %arg5[%c0_25, %c0_26, %c0_27, %c0_28] : memref<1x2x4x128xf32, #tpu.memory_space<vmem>>, vector<1x2x4x128xf32>
    tpu.vector_store %arg5[%c0_25, %c0_26, %c0_27, %c0_28], %37 {strides = array<i32>} : memref<1x2x4x128xf32, #tpu.memory_space<vmem>>, vector<1x2x4x128xf32>,
    return
  }
  func.func @transform_0(%arg0: i32, %arg1: i32) -> (i32, i32, i32, i32) {
    %c0_i32 = arith.constant 0 : i32
    %c0_i32_0 = arith.constant 0 : i32
    %c0_i32_1 = arith.constant 0 : i32
    return %arg1, %arg0, %c0_i32, %c0_i32_0 : i32, i32, i32, i32
  }
  func.func @transform_1(%arg0: i32, %arg1: i32) -> (i32, i32, i32) {
    %c0_i32 = arith.constant 0 : i32
    %c0_i32_0 = arith.constant 0 : i32
    %c0_i32_1 = arith.constant 0 : i32
    return %arg0, %c0_i32, %c0_i32_0 : i32, i32, i32
  }
  func.func @transform_2(%arg0: i32, %arg1: i32) -> (i32, i32, i32) {
    %c0_i32 = arith.constant 0 : i32
    %c0_i32_0 = arith.constant 0 : i32
    %c0_i32_1 = arith.constant 0 : i32
    return %arg0, %c0_i32, %c0_i32_0 : i32, i32, i32
  }
  func.func @transform_3(%arg0: i32, %arg1: i32) -> (i32, i32, i32, i32) {
    %c0_i32 = arith.constant 0 : i32
    %c0_i32_0 = arith.constant 0 : i32
    %c0_i32_1 = arith.constant 0 : i32
    return %arg1, %arg0, %c0_i32, %c0_i32_0 : i32, i32, i32, i32
  }
}

</mosaic_0001>

<bundles_post_ra>
// kernel: tpu_custom_call.1
= control target key start
LH: loop header
LB: loop body
LE: loop exit
PB: predicated region body
PF: predicated region fallthrough
CT: control target
= control target key end

     0   :  { %8 = vsyncpa [#allocation3], 0  ;;  %s816_s0 = inlined_call_operand.vmem [shape: f32[2,2,4,128], index: 0, kind: input, shape index: {}]   ;;  %s817_s1 = inlined_call_operand.vmem [shape: f32[2,4,1], index: 1, kind: input, shape index: {}]   ;;  %s818_s2 = inlined_call_operand.vmem [shape: f32[2,4,1], index: 2, kind: input, shape index: {}]   ;;  %s819_s3 = inlined_call_operand.hbm [shape: f32[2,2,4,128], index: 3, kind: output, shape index: {}]  }
   0x1   :  { %10 = vsyncpa [#allocation3 + $0x1], 0  ;;  %s669_s12 = smov 0   ;;  %s671_s13 = smov 0  }
   0x2   :  { %s673_s14 = smov 0   ;;  %s675_s15 = smov 0  }
   0x3   :  { %s677_s16 = smov 0   ;;  %s679_s17 = smov 0  }
   0x4 LB: > { %s480_s18 = sadd.s32 4294967295, %s643_s17   ;;  %s481_s19 = sadd.s32 4294967294, %s643_s17   ;;  %s643_s17 = sphi %s679_s17, %s16_s17   ;;  %s639_s16 = sphi %s677_s16, %s826_s16   ;;  %s635_s15 = sphi %s675_s15, %s825_s15   ;;  %s631_s14 = sphi %s673_s14, %s824_s14   ;;  %s627_s13 = sphi %s671_s13, %s823_s13   ;;  %s623_s12 = sphi %s669_s12, %s822_s12  }
   0x5   : > { %s25_s20 = sadd.s32 1, %s639_s16  ;;  %s117_s21 = sadd.s32 1, %s631_s14 }
   0x6   : > { %p26_p0 = scmp.ge.s32.totalorder %s25_s20, 2  ;;  %p127_p1 = scmp.ne.s32.totalorder %s631_s14, %s627_s13 }
   0x7   : > { %p128_p2 = scmp.eq.s32.totalorder %s480_s18, 1  ;;  %p133_p3 = scmp.ne.s32.totalorder %s627_s13, %s623_s12 }
   0x8   : > { %s828_s20 = smov (%p26_p0, %s25_s20), 0  ;;  %p134_p5 = scmp.eq.s32.totalorder %s481_s19, 1 }
   0x9   : > { %p709_p4 = por %p128_p2, %p127_p1  ;;  %s112_s23 = ssub.s32 %s639_s16, %s828_s20 }
   0xa   : > { %p486_p6 = scmp.ge.s32.totalorder %s643_s17, 1  ;;  %p115_p7 = scmp.eq.s32.totalorder %s112_s23, 0 }
   0xb   : > { %p716_p8 = por %p134_p5, %p133_p3  ;;  %p183_p9 = scmp.lt.s32.totalorder %s643_s17, 3 }
   0xc   : > { %s722_s25 = scalar_select %p115_p7, %s631_s14, %s117_s21  }
   0xd   : > { %p184_p10 = pnand %p486_p6, %p183_p9 }
   0xe   : > { %p222_p11 = scmp.lt.s32.totalorder (!%p184_p10), %s635_s15, 1  ;;  %vm246_vm0 = vcmask (!%p184_p10), 1043456   ;;  %v645_v8 = vmov (!%p184_p10), 0   ;;  %v319_v63 = vld [vmem:[%s817_s1] sm:$0xf] (!%p184_p10)  ;;  %s218_s18 = sand.u32 (!%p184_p10), 1, %s627_s13  }
   0xf   : > { %187 = sbr.rel (%p184_p10) target bundleno = 380 (0x17c), region = 32  ;;  %555 = vset.pattern.permute.xlu0 (!%p184_p10), %v645_v8  ;;  %556 = vset.pattern.permute.xlu1 (!%p184_p10), %v645_v8  ;;  %v321_v8 = vld [vmem:[%s818_s2] sm:$0xf] (!%p184_p10)  ;;  %s487_s19 = sshll.u32 (!%p184_p10), %s218_s18, 3 }
  0x10   : > { %s220_s21 = scalar_lea.vmem (!%p184_p10), [#allocation2], %s487_s19 }
  0x11   : > { %s371_s23 = sshll.u32 (!%p184_p10), %s220_s21, 4  ;;  %s763_s23 = int_to_ptr.vmem [resolvable:$true] %s371_s23 }
  0x12   : > { %s565_s4 = scalar_lea.vmem (!%p184_p10), %s763_s23, 128 }
  0x13   : > { %p566_p12 = scmp.ne.s32.totalorder (!%p184_p10), %s763_s23, %s565_s4 }
  0x15   : > { %p567_p13 = pnand (!%p184_p10), %p566_p12, %p709_p4 }
  0x16   : > { %s223_s26 = scalar_select %p222_p11, %s635_s15, 1 }
  0x17   : > { %p568_p0 = pneg %p567_p13 }
  0x18   : > { %s495_s27 = sshll.u32 %s223_s26, 3  ;;  %s496_s26 = sshll.u32 %s635_s15, 7 }
  0x19   : > { %s229_s30 = scalar_lea.vmem %s816_s0, %s495_s27  ;;  %s768_s29 = scalar_lea.hbm %s819_s3, %s496_s26 }
  0x1a   : > { %v729_v0 = vld [vmem:[%s229_s30] sm:$0xf]  ;;  %v731_v1 = vld [vmem:[%s229_s30 + $0x4] sm:$0xf]  ;;  %s770_s30 = scalar_lea.sflag [#allocation3], %s218_s18  ;;  %s646_s15 = smov [#allocation2]  }
  0x1b   : > { %v247_v2 = vsel %vm246_vm0, %v729_v0, 0.0  ;;  %v267_v3 = vmul.f32 %v729_v0, %v729_v0  ;;  %v268_v4 = vmul.f32 %v731_v1, %v731_v1  ;;  %v250_v6 = vsel %vm246_vm0, %v731_v1, 0.0  ;;  %s569_s5 = sshll.u32 %s646_s15, 4  ;;  %s570_s5 = int_to_ptr.vmem [resolvable:$false] %s569_s5 }
  0x1c   : > { %248 = vadd.xlane.f32.xlu0 %v247_v2  ;;  %s571_s6 = scalar_lea.vmem %s570_s5, 256  ;;  %p572_p1 = scmp.lt.s32.totalorder %s763_s23, %s570_s5 }
  0x1d   : > { %v269_v5 = vsel %vm246_vm0, %v267_v3, 0.0  ;;  %v272_v7 = vsel %vm246_vm0, %v268_v4, 0.0  ;;  %v320_v4 = vld [vmem:[%s817_s1 + $0x4] sm:$0xf]  ;;  %p573_p2 = scmp.lt.s32.totalorder %s571_s6, %s565_s4 }
  0x1e   : > { %270 = vadd.xlane.f32.xlu1 %v269_v5 }
  0x1f   : > { %p574_p3 = por %p573_p2, %p572_p1 }
  0x20   : > { %251 = vadd.xlane.f32.xlu0 %v250_v6 }
  0x21   : > { %p575_p5 = pnand %p574_p3, %p568_p0 }
  0x22   : > { %273 = vadd.xlane.f32.xlu1 %v272_v7 }
  0xa9   : > { %v249_v9 = vpop.xlane.xlu0 %248 }
  0xaa   : > { %v253_v10 = vsel %vm246_vm0, %v249_v9, 0.0 }
  0xab   : > { %v254_v11 = vrot.slane %v253_v10, 4  ;;  %v271_v12 = vpop.xlane.xlu1 %270 }
  0xac   : > { %v275_v13 = vsel %vm246_vm0, %v271_v12, 0.0 }
  0xad   : > { %v255_v14 = vadd.f32 %v254_v11, %v253_v10  ;;  %v276_v15 = vrot.slane %v275_v13, 4  ;;  %v252_v16 = vpop.xlane.xlu0 %251  ;;  %v322_v11 = vld [vmem:[%s818_s2 + $0x4] sm:$0xf] }
  0xae   : > { %v260_v17 = vsel %vm246_vm0, %v252_v16, 0.0 }
  0xaf   : > { %v256_v18 = vrot.slane %v255_v14, 2  ;;  %v277_v19 = vadd.f32 %v276_v15, %v275_v13  ;;  %v261_v20 = vrot.slane %v260_v17, 4  ;;  %v274_v21 = vpop.xlane.xlu1 %273 }
  0xb0   : > { %v282_v22 = vsel %vm246_vm0, %v274_v21, 0.0 }
  0xb1   : > { %v257_v23 = vadd.f32 %v256_v18, %v255_v14  ;;  %v278_v24 = vrot.slane %v277_v19, 2  ;;  %v262_v25 = vadd.f32 %v261_v20, %v260_v17  ;;  %v283_v26 = vrot.slane %v282_v22, 4 }
  0xb3   : > { %v258_v27 = vrot.slane %v257_v23, 1  ;;  %v279_v28 = vadd.f32 %v278_v24, %v277_v19  ;;  %v263_v29 = vrot.slane %v262_v25, 2  ;;  %v284_v30 = vadd.f32 %v283_v26, %v282_v22 }
  0xb5   : > { %v259_v31 = vadd.f32 %v258_v27, %v257_v23  ;;  %v280_v32 = vrot.slane %v279_v28, 1  ;;  %v264_v33 = vadd.f32 %v263_v29, %v262_v25  ;;  %v285_v34 = vrot.slane %v284_v30, 2 }
  0xb7   : > { %v289_v35 = vmul.f32 0.001953125, %v259_v31  ;;  %v265_v36 = vrot.slane %v264_v33, 1  ;;  %v286_v37 = vadd.f32 %v285_v34, %v284_v30  ;;  %v281_v39 = vadd.f32 %v280_v32, %v279_v28 }
  0xb9   : > { %v291_v38 = vmul.f32 %v289_v35, %v259_v31  ;;  %v266_v40 = vadd.f32 %v265_v36, %v264_v33  ;;  %v287_v41 = vrot.slane %v286_v37, 1 }
  0xbb   : > { %v293_v42 = vsub.f32 %v281_v39, %v291_v38  ;;  %v290_v43 = vmul.f32 0.001953125, %v266_v40  ;;  %v288_v46 = vadd.f32 %v287_v41, %v286_v37 }
  0xbd   : > { %v295_v44 = vmul.f32 0.0019569471, %v293_v42  ;;  %v292_v45 = vmul.f32 %v290_v43, %v266_v40 }
  0xbf   : > { %v297_v47 = vmax.f32 %v295_v44, 0.0  ;;  %v294_v48 = vsub.f32 %v288_v46, %v292_v45 }
  0xc1   : > { %557 = vrsqrt.f32 %v297_v47  ;;  %v296_v49 = vmul.f32 0.0019569471, %v294_v48  ;;  %vm301_vm1 = vcmp.eq.f32.partialorder %v297_v47, inf  ;;  %v304_v53 = vand.u32 2147483648, %v297_v47 }
  0xc2   : > { %vm303_vm2 = vcmp.eq.f32.partialorder %v297_v47, 0.0 }
  0xc3   : > { %v298_v50 = vmax.f32 %v296_v49, 0.0 }
  0xc5   : > { %559 = vrsqrt.f32 %v298_v50  ;;  %vm308_vm3 = vcmp.eq.f32.partialorder %v298_v50, inf  ;;  %v311_v59 = vand.u32 2147483648, %v298_v50  ;;  %vm310_vm4 = vcmp.eq.f32.partialorder %v298_v50, 0.0 }
  0xcb   : > { %v558_v51 = vpop.eup %557 }
  0xcc   : > { %v300_v52 = vmul.f32 %v558_v51, %v297_v47 }
  0xce   : > { %v302_v54 = vsel %vm301_vm1, %v297_v47, %v300_v52 }
  0xcf   : > { %v560_v55 = vpop.eup %559  ;;  %v305_v56 = vsel %vm303_vm2, %v304_v53, %v302_v54 }
  0xd0   : > { %v313_v57 = vadd.f32 1e-10, %v305_v56  ;;  %v307_v58 = vmul.f32 %v560_v55, %v298_v50 }
  0xd2   : > { %561 = vrcp.f32 %v313_v57  ;;  %v309_v60 = vsel %vm308_vm3, %v298_v50, %v307_v58 }
  0xd3   : > { %v312_v61 = vsel %vm310_vm4, %v311_v59, %v309_v60 }
  0xd4   : > { %v314_v62 = vadd.f32 1e-10, %v312_v61 }
  0xd6   : > { %563 = vrcp.f32 %v314_v62 }
  0xdc   : > { %v562_v2 = vpop.eup %561 }
  0xdd   : > { %v323_v3 = vmul.f32 %v562_v2, %v319_v63 }
  0xdf   : > { %331 = vperm.xlu0 %555, %v323_v3   ;;  %v325_v7 = vmul.f32 %v323_v3, %v289_v35 }
  0xe0   : > { %v564_v5 = vpop.eup %563 }
  0xe1   : > { %v324_v6 = vmul.f32 %v564_v5, %v320_v4  ;;  %v327_v9 = vsub.f32 %v321_v8, %v325_v7 }
  0xe3   : > { %336 = vperm.xlu1 %556, %v324_v6   ;;  %v326_v10 = vmul.f32 %v324_v6, %v290_v43 }
  0xe5   : > { %v328_v12 = vsub.f32 %v322_v11, %v326_v10 }
  0xe7   : > { %343 = vperm.xlu1 %556, %v327_v9  }
  0xeb   : > { %348 = vperm.xlu1 %556, %v328_v12  }
 0x15e   : > { %v332_v13 = vpop.permute.xlu0 %331 }
 0x15f   : > { %v339_v15 = vmul.f32 %v332_v13, %v729_v0 }
 0x162   : > { %v337_v14 = vpop.permute.xlu1 %336 }
 0x163   : > { %v340_v18 = vmul.f32 %v337_v14, %v731_v1 }
 0x166   : > { %v344_v16 = vpop.permute.xlu1 %343 }
 0x167   : > { %v351_v17 = vadd.f32 %v344_v16, %v339_v15 }
 0x169   : > { %353 = vst [vmem:[%s220_s21] sm:$0xf] %v351_v17 }
 0x16a   : > { %v349_v19 = vpop.permute.xlu1 %348 }
 0x16b   : > { %v352_v20 = vadd.f32 %v349_v19, %v340_v18 }
 0x16d   : > { %354 = vst [vmem:[%s220_s21 + $0x4] sm:$0xf] %v352_v20 }
 0x16e   : > { %578 = shalt.err (!%p575_p5)
}
 0x16f   : > { %s579_s7 = scalar_lea.hbm %s768_s29, 128  ;;  %s583_s10 = scalar_lea.hbm %s819_s3, 256 }
 0x170   : > { %p580_p6 = scmp.ne.s32.totalorder %s768_s29, %s579_s7  ;;  %p584_p10 = scmp.lt.u32.totalorder %s768_s29, %s819_s3 }
 0x171   : > { %p585_p11 = scmp.lt.u32.totalorder %s583_s10, %s579_s7  ;;  %p587_p13 = scmp.lt.u32.totalorder %s579_s7, %s768_s29 }
 0x172   : > { %p581_p7 = pnand %p580_p6, %p709_p4 }
 0x173   : > { %p586_p12 = por %p585_p11, %p584_p10 }
 0x174   : > { %p582_p9 = pneg %p581_p7 }
 0x175   : > { %p588_p0 = por %p587_p13, %p586_p12 }
 0x177   : > { %p589_p1 = pnand %p588_p0, %p582_p9 }
 0x179   : > { %592 = shalt.err (!%p589_p1)
}
 0x17a   : > { %s647_s19 = smov 64   ;;  %s648_s21 = smov 4  }
 0x17b   : > { %497 = dma.vmem_to_hbm [thread:$0]  (%p709_p4), %s763_s23, 128, %s768_s29, %s770_s30, %s647_s19, %s647_s19, %s648_s21  }
 0x17c PF: > { %p503_p2 = scmp.ge.s32.totalorder %s643_s17, 2  ;;  %s386_s26 = sand.u32 1, %s623_s12  }
 0x17d   : > { %s387_s27 = scalar_lea.sflag [#allocation3], %s386_s26 }
 0x17e   : > { %p500_p3 = pnand %p503_p2, %p716_p8 }
 0x180   : > { %618 = dma.done.wait (!%p500_p3), %s387_s27, 128  }
 0x181   : > { %620 = vsyncadd (!%p500_p3), %s387_s27, 4294967168  ;;  %s16_s17 = sadd.s32 1, %s643_s17   ;;  %s822_s12 = smov %s627_s13 }
 0x182   : > { %p13_p5 = scmp.ge.s32.totalorder %s16_s17, 4   ;;  %s823_s13 = smov %s631_s14 }
 0x183   : > { %s824_s14 = smov %s722_s25  ;;  %s825_s15 = smov %s639_s16 }
 0x184   : > { %s826_s16 = smov %s828_s20  ;;  %15 = sbr.rel (!%p13_p5) target bundleno = 4 (0x4), region = 73 }
 0x18b   :  { %392 = vsyncpa [#allocation3], 1 }
 0x18c   :  { %394 = vsyncpa [#allocation3 + $0x1], 1 }

</bundles_post_ra>
